<compile_context>
chip_gen: v5e
topology: v5e:2x2
jax: 0.10.0
libtpu: 0.0.40
codegen_flags: <defaults>
</compile_context>

<pallas_src>
import jax
import jax.numpy as jnp
from jax.experimental import pallas as pl
from jax.experimental.pallas import tpu as pltpu

LAYER_SIZE = 128     # L ; each CorticalLayer is Linear(2L -> L)
BETA = 0.99
THRESHOLD = 1.0
TILE_M_MAX = 1024    # mem-bound: big batch tiles (~85% of HBM roofline), still tiny in VMEM


def middle_area_kernel(x_ref, wg_ref, thr_g_ref, ws_ref, thr_s_ref, s_ref):
    # granular: zero recurrent spikes & zero membrane -> spk = (x @ Wg[:, :L].T + bg > 1)
    # bias folded into threshold on host: (z + b > 1)  <=>  (z > 1 - b)  up to ulp rounding.
    zg = jnp.dot(x_ref[...], wg_ref[...], preferred_element_type=jnp.float32)
    g = (zg > thr_g_ref[...]).astype(jnp.float32)
    # superficial: same collapsed Leaky; this is the value MiddleArea.forward returns.
    zs = jnp.dot(g, ws_ref[...], preferred_element_type=jnp.float32)
    s_ref[...] = (zs > thr_s_ref[...]).astype(s_ref.dtype)   # bf16 0.0/1.0 is lossless
    # deep layer: output unused and state never stored -> pruned (dead code in the module).


def prepare_params(wg, bg, ws, bs, wd, bd):
    """One-time host-side prep.

    PyTorch nn.Linear layout in: W[out=L, in=2L], b[L].  The second half of `in` only ever
    multiplies the always-zero recurrent spikes, and the deep layer is dead, so keep only the
    live [L, L] halves (transposed so the kernel computes x @ W) and fold biases into
    per-neuron thresholds.
    """
    L = LAYER_SIZE
    del wd, bd  # deep layer output is unused by MiddleArea.forward
    return (wg[:, :L].T, (THRESHOLD - bg).reshape(1, L),
            ws[:, :L].T, (THRESHOLD - bs).reshape(1, L))


def _pick_tile_m(M):
    """Batch tile: as large as possible (<= TILE_M_MAX) while keeping >=2 grid steps when the
    batch allows it, so dimension_semantics=('parallel',) can feed both v7x TensorCores."""
    half = ((pl.cdiv(M, 2) + 7) // 8) * 8      # sublane (8)-aligned half of the batch
    return max(8, min(TILE_M_MAX, half))


def middle_area_forward(x, kernel_params):
    """Batched MiddleArea.forward: x is (M, L) f32; returns superficial spikes (M, L) bf16."""
    L = LAYER_SIZE
    wg_t, thr_g, ws_t, thr_s = kernel_params
    M = x.shape[0]
    tm = _pick_tile_m(M)

    row_spec = pl.BlockSpec((tm, L), lambda i: (i, 0))   # lane-dense in/out tiles
    w_spec = pl.BlockSpec((L, L), lambda i: (0, 0))      # weights resident across batch tiles
    t_spec = pl.BlockSpec((1, L), lambda i: (0, 0))

    return pl.pallas_call(
        middle_area_kernel,
        out_shape=jax.ShapeDtypeStruct((M, L), jnp.bfloat16),
        grid=(pl.cdiv(M, tm),),                          # partial last block masked by Pallas
        in_specs=[row_spec, w_spec, t_spec, w_spec, t_spec],
        out_specs=row_spec,
        compiler_params=pltpu.CompilerParams(
            dimension_semantics=("parallel",)),          # batch tiles shard across v7x's 2 TCs
    )(x, wg_t, thr_g, ws_t, thr_s)


def _reference_forward(x, wg, bg, ws, bs, wd, bd):
    """Pure-JAX replica of the FULL module math (concat with zero spikes, full 2L Linears,
    beta-leak + subtract-reset Leaky with zero membrane), f32 HIGHEST precision.
    Returns (superficial spikes, pre-threshold z of granular and superficial) for checking."""
    hi = jax.lax.Precision.HIGHEST

    def cortical(inp, w, b):
        spk_zero = jnp.zeros_like(inp)
        mem_zero = jnp.zeros_like(inp)
        z = jnp.dot(jnp.concatenate([inp, spk_zero], axis=1), w.T, precision=hi) + b
        reset = (mem_zero > THRESHOLD).astype(jnp.float32)
        mem_new = BETA * mem_zero + z - reset * THRESHOLD
        return (mem_new > THRESHOLD).astype(jnp.float32), mem_new

    g, zg = cortical(x, wg, bg)
    s, zs = cortical(g, ws, bs)
    _d, _ = cortical(s, wd, bd)   # deep: computed by the module, discarded
    return s, zg, zs


if __name__ == "__main__":
    L = LAYER_SIZE
    M = 300   # independent forwards batched along sublanes; exercises the partial last block
    key = jax.random.PRNGKey(0)
    k = jax.random.split(key, 7)
    bound = 1.0 / jnp.sqrt(2.0 * L)  # nn.Linear default uniform init bound

    # PyTorch nn.Linear layout: W[out_features, in_features], b[out_features]
    wg = jax.random.uniform(k[0], (L, 2 * L), jnp.float32, -bound, bound)
    bg = jax.random.uniform(k[1], (L,), jnp.float32, -bound, bound)
    ws = jax.random.uniform(k[2], (L, 2 * L), jnp.float32, -bound, bound)
    bs = jax.random.uniform(k[3], (L,), jnp.float32, -bound, bound)
    wd = jax.random.uniform(k[4], (L, 2 * L), jnp.float32, -bound, bound)
    bd = jax.random.uniform(k[5], (L,), jnp.float32, -bound, bound)

    # Inputs scaled up so a reasonable fraction of membrane potentials cross threshold 1.0.
    x = jax.random.normal(k[6], (M, L), jnp.float32) * 4.0

    kernel_params = prepare_params(wg, bg, ws, bs, wd, bd)
    out = jax.block_until_ready(middle_area_forward(x, kernel_params))
    assert out.shape == (M, L) and out.dtype == jnp.bfloat16

    # Full-semantics reference check.  Spikes are hard thresholds of f32 matmul results, so
    # accumulation-order / bias-folding ulp differences can flip exactly-borderline neurons;
    # exclude rows/elements whose reference pre-activation is within eps of threshold.
    ref_s, ref_zg, ref_zs = _reference_forward(x, wg, bg, ws, bs, wd, bd)
    eps = 2e-3
    row_ok = ~jnp.any(jnp.abs(ref_zg - THRESHOLD) < eps, axis=1, keepdims=True)
    elem_ok = jnp.abs(ref_zs - THRESHOLD) >= eps
    check_mask = row_ok & elem_ok
    out_f32 = out.astype(jnp.float32)   # bf16 spike values 0.0/1.0 are exact
    assert jnp.all(jnp.where(check_mask, out_f32 == ref_s, True)), \
        "Pallas output mismatch vs. full-semantics JAX reference"
    # Make sure the check is not vacuous (vast majority of entries are actually compared).
    assert jnp.mean(check_mask.astype(jnp.float32)) > 0.8

    # Original module contract (batch = 1): single partial block, no host-side pad/slice copies.
    out1 = jax.block_until_ready(middle_area_forward(x[:1], kernel_params))
    assert out1.shape == (1, L)
    assert jnp.all(jnp.where(check_mask[:1], out1.astype(jnp.float32) == ref_s[:1], True))

    # TODO(synk): the optimizer/loss/backward code in CorticalLayer.forward is unreachable
    # (after `return spk`) and is intentionally not implemented.
    print("KERNEL_OK")
</pallas_src>

<mosaic_0001>
module attributes {stable_mosaic.version = 11 : i64} {
  func.func @middle_area_kernel(%arg0: i32, %arg1: memref<152x128xf32, #tpu.memory_space<vmem>>, %arg2: memref<128x128xf32, #tpu.memory_space<vmem>>, %arg3: memref<1x128xf32, #tpu.memory_space<vmem>>, %arg4: memref<128x128xf32, #tpu.memory_space<vmem>>, %arg5: memref<1x128xf32, #tpu.memory_space<vmem>>, %arg6: memref<152x128xbf16, #tpu.memory_space<vmem>>) attributes {dimension_semantics = [#tpu.dimension_semantics<parallel>], iteration_bounds = array<i64: 2>, scalar_prefetch = 0 : i64, scratch_operands = 0 : i64, tpu.core_type = #tpu.core_type<tc>, window_params = [{transform_indices = @transform_0, window_bounds = array<i64: 152, 128>}, {pipeline_mode = #tpu.pipeline_mode<synchronous>, transform_indices = @transform_1, window_bounds = array<i64: 128, 128>}, {pipeline_mode = #tpu.pipeline_mode<synchronous>, transform_indices = @transform_2, window_bounds = array<i64: 1, 128>}, {pipeline_mode = #tpu.pipeline_mode<synchronous>, transform_indices = @transform_3, window_bounds = array<i64: 128, 128>}, {pipeline_mode = #tpu.pipeline_mode<synchronous>, transform_indices = @transform_4, window_bounds = array<i64: 1, 128>}, {transform_indices = @transform_5, window_bounds = array<i64: 152, 128>}]} {
    %c0 = arith.constant 0 : index
    %c0_0 = arith.constant 0 : index
    %0 = vector.load %arg1[%c0, %c0_0] : memref<152x128xf32, #tpu.memory_space<vmem>>, vector<152x128xf32>
    %c0_1 = arith.constant 0 : index
    %c0_2 = arith.constant 0 : index
    %1 = vector.load %arg2[%c0_1, %c0_2] : memref<128x128xf32, #tpu.memory_space<vmem>>, vector<128x128xf32>
    %cst = arith.constant dense<0.000000e+00> : vector<152x128xf32>
    %2 = tpu.matmul %0, %1, %cst {dimension_numbers = #tpu.dot_dimension_numbers<[1], [0], [0], [1], [0, 0, 1, 1], [], []>} : vector<152x128xf32>, vector<128x128xf32>, vector<152x128xf32> -> vector<152x128xf32>
    %c0_3 = arith.constant 0 : index
    %c0_4 = arith.constant 0 : index
    %3 = vector.load %arg3[%c0_3, %c0_4] : memref<1x128xf32, #tpu.memory_space<vmem>>, vector<1x128xf32>
    %4 = vector.broadcast %3 : vector<1x128xf32> to vector<152x128xf32>
    %5 = arith.cmpf ogt, %2, %4 : vector<152x128xf32>
    %6 = arith.extui %5 : vector<152x128xi1> to vector<152x128xi32>
    %7 = arith.sitofp %6 : vector<152x128xi32> to vector<152x128xf32>
    %c0_5 = arith.constant 0 : index
    %c0_6 = arith.constant 0 : index
    %8 = vector.load %arg4[%c0_5, %c0_6] : memref<128x128xf32, #tpu.memory_space<vmem>>, vector<128x128xf32>
    %cst_7 = arith.constant dense<0.000000e+00> : vector<152x128xf32>
    %9 = tpu.matmul %7, %8, %cst_7 {dimension_numbers = #tpu.dot_dimension_numbers<[1], [0], [0], [1], [0, 0, 1, 1], [], []>} : vector<152x128xf32>, vector<128x128xf32>, vector<152x128xf32> -> vector<152x128xf32>
    %c0_8 = arith.constant 0 : index
    %c0_9 = arith.constant 0 : index
    %10 = vector.load %arg5[%c0_8, %c0_9] : memref<1x128xf32, #tpu.memory_space<vmem>>, vector<1x128xf32>
    %11 = vector.broadcast %10 : vector<1x128xf32> to vector<152x128xf32>
    %12 = arith.cmpf ogt, %9, %11 : vector<152x128xf32>
    %13 = arith.extui %12 : vector<152x128xi1> to vector<152x128xi32>
    %14 = arith.sitofp %13 : vector<152x128xi32> to vector<152x128xf32>
    %15 = arith.truncf %14 : vector<152x128xf32> to vector<152x128xbf16>
    %c0_10 = arith.constant 0 : index
    %c0_11 = arith.constant 0 : index
    %16 = vector.load %arg6[%c0_10, %c0_11] : memref<152x128xbf16, #tpu.memory_space<vmem>>, vector<152x128xbf16>
    tpu.vector_store %arg6[%c0_10, %c0_11], %15 {strides = array<i32>} : memref<152x128xbf16, #tpu.memory_space<vmem>>, vector<152x128xbf16>,
    return
  }
  func.func @transform_0(%arg0: i32) -> (i32, i32) {
    %c0_i32 = arith.constant 0 : i32
    %c0_i32_0 = arith.constant 0 : i32
    return %arg0, %c0_i32 : i32, i32
  }
  func.func @transform_1(%arg0: i32) -> (i32, i32) {
    %c0_i32 = arith.constant 0 : i32
    %c0_i32_0 = arith.constant 0 : i32
    %c0_i32_1 = arith.constant 0 : i32
    return %c0_i32, %c0_i32_0 : i32, i32
  }
  func.func @transform_2(%arg0: i32) -> (i32, i32) {
    %c0_i32 = arith.constant 0 : i32
    %c0_i32_0 = arith.constant 0 : i32
    %c0_i32_1 = arith.constant 0 : i32
    return %c0_i32, %c0_i32_0 : i32, i32
  }
  func.func @transform_3(%arg0: i32) -> (i32, i32) {
    %c0_i32 = arith.constant 0 : i32
    %c0_i32_0 = arith.constant 0 : i32
    %c0_i32_1 = arith.constant 0 : i32
    return %c0_i32, %c0_i32_0 : i32, i32
  }
  func.func @transform_4(%arg0: i32) -> (i32, i32) {
    %c0_i32 = arith.constant 0 : i32
    %c0_i32_0 = arith.constant 0 : i32
    %c0_i32_1 = arith.constant 0 : i32
    return %c0_i32, %c0_i32_0 : i32, i32
  }
  func.func @transform_5(%arg0: i32) -> (i32, i32) {
    %c0_i32 = arith.constant 0 : i32
    %c0_i32_0 = arith.constant 0 : i32
    return %arg0, %c0_i32 : i32, i32
  }
}

</mosaic_0001>

<bundles_post_ra>
// kernel: tpu_custom_call.1
= control target key start
LH: loop header
LB: loop body
LE: loop exit
PB: predicated region body
PF: predicated region fallthrough
CT: control target
= control target key end

     0   :  { %s1394_s0 = inlined_call_operand.hbm [shape: f32[300,128], index: 0, kind: input, shape index: {}]   ;;  %s1395_s1 = inlined_call_operand.hbm [shape: f32[128,128], index: 1, kind: input, shape index: {}]   ;;  %s1396_s2 = inlined_call_operand.vmem [shape: f32[1,128], index: 2, kind: input, shape index: {}]   ;;  %s1397_s3 = inlined_call_operand.hbm [shape: f32[128,128], index: 3, kind: input, shape index: {}]   ;;  %s1398_s4 = inlined_call_operand.vmem [shape: f32[1,128], index: 4, kind: input, shape index: {}]   ;;  %s1399_s5 = inlined_call_operand.hbm [shape: bf16[300,128], index: 5, kind: output, shape index: {}]  }
   0x1   :  { %1402 = sst [smem:[#allocation12_spill]] %s1395_s1 }
   0x2   :  { %10 = vsyncpa [#allocation3], 0 }
   0x3   :  { %12 = vsyncpa [#allocation3 + $0x1], 0 }
   0x4   :  { %13 = vsyncpa [#allocation6], 0 }
   0x5   :  { %14 = vsyncpa [#allocation4], 0 }
   0x6   :  { %16 = vsyncpa [#allocation4 + $0x1], 0  ;;  %s1163_s18 = smov 0   ;;  %s1165_s19 = smov 0  }
   0x7   :  { %s1167_s20 = smov 0   ;;  %s1169_s21 = smov 0  }
   0x8 LB: > { %s1184_s22 = sadd.s32 4294967295, %s1123_s21   ;;  %s747_s23 = sadd.s32 4294967294, %s1123_s21   ;;  %s1123_s21 = sphi %s1169_s21, %s1415_s21   ;;  %s1119_s20 = sphi %s1167_s20, %s1414_s20   ;;  %s1115_s19 = sphi %s1165_s19, %s1413_s19   ;;  %s1111_s18 = sphi %s1163_s18, %s1412_s18  }
   0x9   : > { %p42_p0 = scmp.ne.s32.totalorder %s1115_s19, %s1111_s18  ;;  %p43_p1 = scmp.eq.s32.totalorder %s1184_s22, 0 }
   0xa   : > { %p150_p2 = scmp.eq.s32.totalorder %s1184_s22, 1  ;;  %p156_p3 = scmp.eq.s32.totalorder %s747_s23, 1 }
   0xb   : > { %p1193_p4 = por %p43_p1, %p42_p0  ;;  %p748_p5 = scmp.ge.s32.totalorder %s1123_s21, 1 }
   0xc   : > { %p1198_p6 = por %p156_p3, %p42_p0  ;;  %p163_p7 = scmp.lt.s32.totalorder %s1123_s21, 3 }
   0xd   : > { %s1405_s1 = sld [smem:[#allocation12_spill]]  ;;  %s1125_s30 = smov [#allocation5]  }
   0xe   : > { %p1206_p8 = pnand %p748_p5, %p163_p7  ;;  %s176_s6 = sshll.u32 %s1125_s30, 4  ;;  %s177_s6 = int_to_ptr.vmem [resolvable:$true] %s176_s6 }
   0xf   : > { %s191_s9 = sshll.u32 %s1397_s3, 4  ;;  %s1400_s10 = smov 128   ;;  %s192_s9 = int_to_ptr.hbm [resolvable:$true] %s191_s9 }
  0x10   : > { %p900_p9 = pneg %p1206_p8  ;;  %s1401_s11 = smov 8  }
  0x11   : > { %s1128_s12 = smov [#allocation7]   ;;  %s1225_s14 = sadd.s32 1, %s1123_s21  }
  0x12   : > { %p901_p10 = pnand %p900_p9, %p43_p1  ;;  %s193_s13 = sshll.u32 %s1128_s12, 4  ;;  %s194_s13 = int_to_ptr.vmem [resolvable:$true] %s193_s13 }
  0x13   : > { %s174_s28 = sshll.u32 %s1405_s1, 4  ;;  %s29_s15 = sadd.s32 1, %s1119_s20  ;;  %s175_s28 = int_to_ptr.hbm [resolvable:$true] %s174_s28 }
  0x14   : > { %903 = dma.hbm_to_vmem [thread:$0]  (!%p901_p10), %s175_s28, 2048, %s177_s6, [#allocation6], %s1400_s10, %s1400_s10, %s1401_s11  }
  0x15   : > { %906 = dma.hbm_to_vmem [thread:$0]  (!%p901_p10), %s192_s9, 2048, %s194_s13, [#allocation6], %s1400_s10, %s1400_s10, %s1401_s11  }
  0x16   : > { %s26_s16 = ssub.s32 %s1123_s21, %s1225_s14  ;;  %p36_p12 = scmp.ne.s32.totalorder %s1119_s20, %s1115_s19 }
  0x17   : > { %p27_p13 = scmp.eq.s32.totalorder %s26_s16, 0  ;;  %p37_p0 = scmp.eq.s32.totalorder %s1123_s21, 0 }
  0x18   : > { %p1235_p3 = por %p150_p2, %p36_p12  ;;  %p917_p5 = scmp.lt.s32.totalorder %s1123_s21, 2 }
  0x19   : > { %s1241_s23 = scalar_select %p27_p13, %s1119_s20, %s29_s15  }
  0x1a   : > { %p38_p7 = por %p37_p0, %p36_p12  ;;  %s210_s26 = sand.u32 1, %s1119_s20  }
  0x1b   : > { %s885_s27 = smul.u32 152, %s210_s26  ;;  %s211_s15 = scalar_lea.sflag [#allocation3], %s210_s26 }
  0x1c   : > { %s816_s28 = smul.u32 152, %s1123_s21  ;;  %p1245_p9 = pnand %p917_p5, %p38_p7 }
  0x1d   : > { %s214_s9 = scalar_lea.vmem [#allocation2], %s885_s27  ;;  %s1030_s6 = scalar_lea.hbm %s1394_s0, 304 }
  0x1e   : > { %s219_s8 = scalar_lea.hbm %s1394_s0, %s816_s28  ;;  %s222_s12 = sshll.u32 %s214_s9, 4  ;;  %s223_s12 = int_to_ptr.vmem [resolvable:$true] %s222_s12 }
  0x1f   : > { %s220_s13 = sshll.u32 %s219_s8, 4  ;;  %p1027_p10 = pneg %p1245_p9  ;;  %s221_s13 = int_to_ptr.hbm [resolvable:$true] %s220_s13 }
  0x20   : > { %s1023_s16 = sshra.s32 %s221_s13, 4  ;;  %s1024_s16 = int_to_ptr.hbm [resolvable:$true] %s1023_s16 }
  0x21   : > { %s1025_s10 = scalar_lea.hbm %s1024_s16, 152  ;;  %p1031_p0 = scmp.lt.s32.totalorder %s1024_s16, %s1394_s0 }
  0x22   : > { %p1026_p2 = scmp.ne.s32.totalorder %s1024_s16, %s1025_s10  ;;  %p1032_p5 = scmp.lt.s32.totalorder %s1030_s6, %s1025_s10 }
  0x24   : > { %p1028_p12 = pnand %p1027_p10, %p1026_p2  ;;  %p1033_p7 = por %p1032_p5, %p1031_p0 }
  0x26   : > { %p1029_p13 = pneg %p1028_p12 }
  0x28   : > { %p1034_p11 = pnand %p1033_p7, %p1029_p13 }
  0x2a   : > { %1037 = shalt.err (!%p1034_p11)
}
  0x2b   : > { %s1409_s26 = smov 8   ;;  %s1410_s27 = smov 128  }
  0x2c   : > { %910 = dma.hbm_to_vmem [thread:$0]  (!%p1245_p9), %s221_s13, 2432, %s223_s12, %s211_s15, %s1410_s27, %s1410_s27, %s1409_s26  }
  0x2d   : > { %234 = sbr.rel (%p1206_p8) target bundleno = 430 (0x1ae), region = 40  ;;  %s1268_s1 = sand.u32 (!%p1206_p8), 1, %s1115_s19  }
  0x2e   : > { %s886_s11 = smul.u32 (!%p1206_p8), 152, %s1268_s1  ;;  %s237_s10 = scalar_lea.sflag (!%p1206_p8), [#allocation3], %s1268_s1 }
  0x30   : > { %s1272_s8 = scalar_lea.vmem (!%p1206_p8), [#allocation2], %s886_s11 }
  0x32   : > { %1098 = dma.done.wait (%p1193_p4), %s237_s10, 2432  }
  0x33   : > { %1100 = vsyncadd (%p1193_p4), %s237_s10, 4294964864 }
  0x34   : > { %1102 = dma.done.wait (%p43_p1), [#allocation6], 4096  }
  0x35   : > { %1104 = vsyncadd (%p43_p1), [#allocation6], 4294963200  ;;  %v314_v0 = vld [vmem:[#allocation5 + $0x78] sm:$0xff]  ;;  %v313_v1 = vld [vmem:[#allocation5 + $0x70] sm:$0xff]  ;;  %v1129_v53 = vmov 1.0   ;;  %s887_s12 = smul.u32 76, %s1268_s1 }
  0x36   : > { %315 = vmatpush.msra.mxu0 %v314_v0  ;;  %853 = vmatpush.msra.mxu2 %v314_v0  ;;  %v312_v2 = vld [vmem:[#allocation5 + $0x68] sm:$0xff]  ;;  %v311_v3 = vld [vmem:[#allocation5 + $0x60] sm:$0xff]  ;;  %v310_v4 = vld [vmem:[#allocation5 + $0x58] sm:$0xff]  ;;  %s817_s15 = smul.u32 76, %s1184_s22  ;;  %s640_s22 = scalar_lea.sflag [#allocation4], %s1268_s1 }
  0x37   : > { %v309_v5 = vld [vmem:[#allocation5 + $0x50] sm:$0xff]  ;;  %v308_v6 = vld [vmem:[#allocation5 + $0x48] sm:$0xff]  ;;  %v307_v7 = vld [vmem:[#allocation5 + $0x40] sm:$0xff]  ;;  %s1314_s13 = scalar_lea.vmem [#allocation8], %s887_s12  ;;  %s1073_s24 = scalar_lea.hbm %s1399_s5, 152 }
  0x38   : > { %316 = vmatpush.msra.mxu0 %v313_v1  ;;  %854 = vmatpush.msra.mxu2 %v313_v1  ;;  %v306_v8 = vld [vmem:[#allocation5 + $0x38] sm:$0xff]  ;;  %v305_v9 = vld [vmem:[#allocation5 + $0x30] sm:$0xff]  ;;  %v304_v10 = vld [vmem:[#allocation5 + $0x28] sm:$0xff]  ;;  %s651_s7 = scalar_lea.hbm %s1399_s5, %s817_s15  ;;  %s652_s28 = sshll.u32 %s1314_s13, 4  ;;  %s653_s28 = int_to_ptr.vmem [resolvable:$true] %s652_s28 }
  0x39   : > { %v303_v11 = vld [vmem:[#allocation5 + $0x20] sm:$0xff]  ;;  %v302_v12 = vld [vmem:[#allocation5 + $0x18] sm:$0xff]  ;;  %v301_v13 = vld [vmem:[#allocation5 + $0x10] sm:$0xff]  ;;  %s654_s26 = sshll.u32 %s651_s7, 4  ;;  %s655_s26 = int_to_ptr.hbm [resolvable:$true] %s654_s26 }
  0x3a   : > { %317 = vmatpush.msra.mxu0 %v312_v2  ;;  %855 = vmatpush.msra.mxu2 %v312_v2  ;;  %v300_v14 = vld [vmem:[#allocation5 + $0x8] sm:$0xff]  ;;  %v299_v15 = vld [vmem:[#allocation5] sm:$0xff]  ;;  %v289_v17 = vld [vmem:[%s1272_s8 + $0x48] sm:$0xff]  ;;  %s1067_s27 = sshra.s32 %s655_s26, 4  ;;  %s1068_s27 = int_to_ptr.hbm [resolvable:$true] %s1067_s27 }
  0x3b   : > { %v280_v16 = vld [vmem:[%s1272_s8] sm:$0xff]  ;;  %v281_v18 = vld [vmem:[%s1272_s8 + $0x8] sm:$0xff]  ;;  %v290_v19 = vld [vmem:[%s1272_s8 + $0x50] sm:$0xff]  ;;  %s1069_s11 = scalar_lea.hbm %s1068_s27, 76  ;;  %p1074_p11 = scmp.lt.s32.totalorder %s1068_s27, %s1399_s5 }
  0x3c   : > { %318 = vmatpush.msra.mxu0 %v311_v3  ;;  %856 = vmatpush.msra.mxu2 %v311_v3  ;;  %v282_v20 = vld [vmem:[%s1272_s8 + $0x10] sm:$0xff]  ;;  %v291_v21 = vld [vmem:[%s1272_s8 + $0x58] sm:$0xff]  ;;  %v292_v23 = vld [vmem:[%s1272_s8 + $0x60] sm:$0xff]  ;;  %p1070_p1 = scmp.ne.s32.totalorder %s1068_s27, %s1069_s11  ;;  %p1075_p9 = scmp.lt.s32.totalorder %s1073_s24, %s1069_s11 }
  0x3d   : > { %v283_v22 = vld [vmem:[%s1272_s8 + $0x18] sm:$0xff]  ;;  %v284_v24 = vld [vmem:[%s1272_s8 + $0x20] sm:$0xff]  ;;  %v293_v25 = vld [vmem:[%s1272_s8 + $0x68] sm:$0xff] }
  0x3e   : > { %319 = vmatpush.msra.mxu0 %v310_v4  ;;  %857 = vmatpush.msra.mxu2 %v310_v4  ;;  %v285_v26 = vld [vmem:[%s1272_s8 + $0x28] sm:$0xff]  ;;  %v294_v27 = vld [vmem:[%s1272_s8 + $0x70] sm:$0xff]  ;;  %v463_v30 = vld [vmem:[#allocation7 + $0x68] sm:$0xff]  ;;  %p1071_p4 = pnand %p1070_p1, %p1235_p3  ;;  %p1076_p2 = por %p1075_p9, %p1074_p11 }
  0x3f   : > { %v465_v28 = vld [vmem:[#allocation7 + $0x78] sm:$0xff]  ;;  %v464_v29 = vld [vmem:[#allocation7 + $0x70] sm:$0xff]  ;;  %v462_v31 = vld [vmem:[#allocation7 + $0x60] sm:$0xff] }
  0x40   : > { %320 = vmatpush.msra.mxu0 %v309_v5  ;;  %858 = vmatpush.msra.mxu2 %v309_v5  ;;  %v286_v32 = vld [vmem:[%s1272_s8 + $0x30] sm:$0xff]  ;;  %v295_v33 = vld [vmem:[%s1272_s8 + $0x78] sm:$0xff]  ;;  %v460_v35 = vld [vmem:[#allocation7 + $0x50] sm:$0xff]  ;;  %p1072_p8 = pneg %p1071_p4 }
  0x41   : > { %466 = vmatpush.msra.mxu1 %v465_v28  ;;  %869 = vmatpush.msra.mxu3 %v465_v28  ;;  %v461_v34 = vld [vmem:[#allocation7 + $0x58] sm:$0xff]  ;;  %v459_v36 = vld [vmem:[#allocation7 + $0x48] sm:$0xff]  ;;  %v458_v37 = vld [vmem:[#allocation7 + $0x40] sm:$0xff] }
  0x42   : > { %321 = vmatpush.msra.mxu0 %v308_v6  ;;  %859 = vmatpush.msra.mxu2 %v308_v6  ;;  %v287_v38 = vld [vmem:[%s1272_s8 + $0x38] sm:$0xff]  ;;  %v296_v39 = vld [vmem:[%s1272_s8 + $0x80] sm:$0xff]  ;;  %v457_v40 = vld [vmem:[#allocation7 + $0x38] sm:$0xff]  ;;  %p1077_p10 = pnand %p1076_p2, %p1072_p8 }
  0x43   : > { %467 = vmatpush.msra.mxu1 %v464_v29  ;;  %870 = vmatpush.msra.mxu3 %v464_v29  ;;  %v456_v41 = vld [vmem:[#allocation7 + $0x30] sm:$0xff]  ;;  %v455_v42 = vld [vmem:[#allocation7 + $0x28] sm:$0xff]  ;;  %v454_v43 = vld [vmem:[#allocation7 + $0x20] sm:$0xff] }
  0x44   : > { %322 = vmatpush.msra.mxu0 %v307_v7  ;;  %860 = vmatpush.msra.mxu2 %v307_v7  ;;  %v288_v44 = vld [vmem:[%s1272_s8 + $0x40] sm:$0xff]  ;;  %v297_v45 = vld [vmem:[%s1272_s8 + $0x88] sm:$0xff]  ;;  %v298_v49 = vld [vmem:[%s1272_s8 + $0x90] sm:$0xff] }
  0x45   : > { %468 = vmatpush.msra.mxu1 %v463_v30  ;;  %871 = vmatpush.msra.mxu3 %v463_v30  ;;  %v453_v46 = vld [vmem:[#allocation7 + $0x18] sm:$0xff]  ;;  %v452_v47 = vld [vmem:[#allocation7 + $0x10] sm:$0xff]  ;;  %v451_v48 = vld [vmem:[#allocation7 + $0x8] sm:$0xff] }
  0x46   : > { %323 = vmatpush.msra.mxu0 %v306_v8  ;;  %861 = vmatpush.msra.mxu2 %v306_v8  ;;  %v450_v50 = vld [vmem:[#allocation7] sm:$0xff]  ;;  %v961_v51 = vld [vmem:[%s1396_s2] ss:$0 sm:$0xff] }
  0x47   : > { %469 = vmatpush.msra.mxu1 %v462_v31  ;;  %872 = vmatpush.msra.mxu3 %v462_v31 }
  0x48   : > { %324 = vmatpush.msra.mxu0 %v305_v9  ;;  %862 = vmatpush.msra.mxu2 %v305_v9  ;;  %v1307_v9 = vld [vmem:[%s1398_s4] ss:$0 sm:$0xff] }
  0x49   : > { %470 = vmatpush.msra.mxu1 %v461_v34  ;;  %873 = vmatpush.msra.mxu3 %v461_v34 }
  0x4a   : > { %325 = vmatpush.msra.mxu0 %v304_v10  ;;  %863 = vmatpush.msra.mxu2 %v304_v10  ;;  %v1130_v10 = vmov 0.0  }
  0x4b   : > { %471 = vmatpush.msra.mxu1 %v460_v35  ;;  %874 = vmatpush.msra.mxu3 %v460_v35 }
  0x4c   : > { %326 = vmatpush.msra.mxu0 %v303_v11  ;;  %864 = vmatpush.msra.mxu2 %v303_v11 }
  0x4d   : > { %472 = vmatpush.msra.mxu1 %v459_v36  ;;  %875 = vmatpush.msra.mxu3 %v459_v36 }
  0x4e   : > { %327 = vmatpush.msra.mxu0 %v302_v12  ;;  %865 = vmatpush.msra.mxu2 %v302_v12 }
  0x4f   : > { %473 = vmatpush.msra.mxu1 %v458_v37  ;;  %876 = vmatpush.msra.mxu3 %v458_v37 }
  0x50   : > { %328 = vmatpush.msra.mxu0 %v301_v13  ;;  %866 = vmatpush.msra.mxu2 %v301_v13 }
  0x51   : > { %474 = vmatpush.msra.mxu1 %v457_v40  ;;  %877 = vmatpush.msra.mxu3 %v457_v40 }
  0x52   : > { %329 = vmatpush.msra.mxu0 %v300_v14  ;;  %867 = vmatpush.msra.mxu2 %v300_v14 }
  0x53   : > { %475 = vmatpush.msra.mxu1 %v456_v41  ;;  %878 = vmatpush.msra.mxu3 %v456_v41 }
  0x54   : > { %330 = vmatpush.msra.mxu0 %v299_v15  ;;  %868 = vmatpush.msra.mxu2 %v299_v15 }
  0x55   : > { %331 = vmatmul.f32.vlgmr.msra.gmra.mxu0 %v280_v16  ;;  %358 = vmatmul.f32.vlgmr.msra.gmra.mxu2 %v289_v17 }
  0x56   : > { %476 = vmatpush.msra.mxu1 %v455_v42  ;;  %879 = vmatpush.msra.mxu3 %v455_v42 }
  0x58   : > { %477 = vmatpush.msra.mxu1 %v454_v43  ;;  %880 = vmatpush.msra.mxu3 %v454_v43 }
  0x5a   : > { %478 = vmatpush.msra.mxu1 %v453_v46  ;;  %881 = vmatpush.msra.mxu3 %v453_v46 }
  0x5c   : > { %479 = vmatpush.msra.mxu1 %v452_v47  ;;  %882 = vmatpush.msra.mxu3 %v452_v47 }
  0x5d   : > { %334 = vmatmul.f32.gmra.mxu0 %v281_v18  ;;  %361 = vmatmul.f32.gmra.mxu2 %v290_v19 }
  0x5e   : > { %480 = vmatpush.msra.mxu1 %v451_v48  ;;  %883 = vmatpush.msra.mxu3 %v451_v48 }
  0x60   : > { %481 = vmatpush.msra.mxu1 %v450_v50  ;;  %884 = vmatpush.msra.mxu3 %v450_v50 }
  0x65   : > { %337 = vmatmul.f32.gmra.mxu0 %v282_v20  ;;  %364 = vmatmul.f32.gmra.mxu2 %v291_v21 }
  0x6d   : > { %340 = vmatmul.f32.gmra.mxu0 %v283_v22  ;;  %367 = vmatmul.f32.gmra.mxu2 %v292_v23 }
  0x75   : > { %343 = vmatmul.f32.gmra.mxu0 %v284_v24  ;;  %370 = vmatmul.f32.gmra.mxu2 %v293_v25 }
  0x7d   : > { %346 = vmatmul.f32.gmra.mxu0 %v285_v26  ;;  %373 = vmatmul.f32.gmra.mxu2 %v294_v27 }
  0x85   : > { %349 = vmatmul.f32.gmra.mxu0 %v286_v32  ;;  %376 = vmatmul.f32.gmra.mxu2 %v295_v33 }
  0x8d   : > { %352 = vmatmul.f32.gmra.mxu0 %v287_v38  ;;  %379 = vmatmul.f32.gmra.mxu2 %v296_v39 }
  0x95   : > { %355 = vmatmul.f32.gmra.mxu0 %v288_v44  ;;  %382 = vmatmul.f32.gmra.mxu2 %v297_v45 }
  0x9d   : > { %385 = vmatmul.f32.gmra.mxu2 %v298_v49 }
  0xd2   : > { %v332_v52 = vpop.f32.mrf.mxu0 }
  0xd3   : > { %vm393_vm0 = vcmp.gt.f32.partialorder %v332_v52, %v961_v51 }
  0xd4   : > { %775 = vmatmul.msk.f32.vlgmr.msra.gmra.mxu1 %vm393_vm0, %v1129_v53 }
  0xd8   : > { %v359_v54 = vpop.f32.mrf.mxu2 }
  0xda   : > { %v335_v55 = vpop.f32.mrf.mxu0 }
  0xdb   : > { %vm394_vm1 = vcmp.gt.f32.partialorder %v335_v55, %v961_v51 }
  0xdc   : > { %776 = vmatmul.msk.f32.gmra.mxu1 %vm394_vm1, %v1129_v53  ;;  %vm402_vm1 = vcmp.gt.f32.partialorder %v359_v54, %v961_v51 }
  0xe0   : > { %v362_v56 = vpop.f32.mrf.mxu2 }
  0xe1   : > { %vm403_vm2 = vcmp.gt.f32.partialorder %v362_v56, %v961_v51 }
  0xe2   : > { %v338_v57 = vpop.f32.mrf.mxu0  ;;  %785 = vmatmul.msk.f32.vlgmr.msra.gmra.mxu3 %vm403_vm2, %v1129_v53 }
  0xe3   : > { %vm395_vm3 = vcmp.gt.f32.partialorder %v338_v57, %v961_v51 }
  0xe4   : > { %777 = vmatmul.msk.f32.gmra.mxu1 %vm395_vm3, %v1129_v53 }
  0xe8   : > { %v365_v58 = vpop.f32.mrf.mxu2 }
  0xe9   : > { %vm404_vm4 = vcmp.gt.f32.partialorder %v365_v58, %v961_v51 }
  0xea   : > { %v341_v59 = vpop.f32.mrf.mxu0  ;;  %786 = vmatmul.msk.f32.gmra.mxu3 %vm404_vm4, %v1129_v53 }
  0xeb   : > { %vm396_vm5 = vcmp.gt.f32.partialorder %v341_v59, %v961_v51 }
  0xec   : > { %778 = vmatmul.msk.f32.gmra.mxu1 %vm396_vm5, %v1129_v53 }
  0xf0   : > { %v368_v60 = vpop.f32.mrf.mxu2 }
  0xf1   : > { %vm405_vm6 = vcmp.gt.f32.partialorder %v368_v60, %v961_v51 }
  0xf2   : > { %v344_v61 = vpop.f32.mrf.mxu0  ;;  %787 = vmatmul.msk.f32.gmra.mxu3 %vm405_vm6, %v1129_v53 }
  0xf3   : > { %vm397_vm7 = vcmp.gt.f32.partialorder %v344_v61, %v961_v51 }
  0xf4   : > { %779 = vmatmul.msk.f32.gmra.mxu1 %vm397_vm7, %v1129_v53 }
  0xf8   : > { %v371_v62 = vpop.f32.mrf.mxu2 }
  0xf9   : > { %vm406_vm8 = vcmp.gt.f32.partialorder %v371_v62, %v961_v51 }
  0xfa   : > { %v347_v63 = vpop.f32.mrf.mxu0  ;;  %788 = vmatmul.msk.f32.gmra.mxu3 %vm406_vm8, %v1129_v53 }
  0xfb   : > { %vm398_vm9 = vcmp.gt.f32.partialorder %v347_v63, %v961_v51 }
  0xfc   : > { %780 = vmatmul.msk.f32.gmra.mxu1 %vm398_vm9, %v1129_v53 }
 0x100   : > { %v374_v0 = vpop.f32.mrf.mxu2 }
 0x101   : > { %vm407_vm10 = vcmp.gt.f32.partialorder %v374_v0, %v961_v51 }
 0x102   : > { %v350_v1 = vpop.f32.mrf.mxu0  ;;  %789 = vmatmul.msk.f32.gmra.mxu3 %vm407_vm10, %v1129_v53 }
 0x103   : > { %vm399_vm11 = vcmp.gt.f32.partialorder %v350_v1, %v961_v51 }
 0x104   : > { %781 = vmatmul.msk.f32.gmra.mxu1 %vm399_vm11, %v1129_v53 }
 0x108   : > { %v377_v2 = vpop.f32.mrf.mxu2 }
 0x109   : > { %vm408_vm12 = vcmp.gt.f32.partialorder %v377_v2, %v961_v51 }
 0x10a   : > { %v353_v3 = vpop.f32.mrf.mxu0  ;;  %790 = vmatmul.msk.f32.gmra.mxu3 %vm408_vm12, %v1129_v53 }
 0x10b   : > { %vm400_vm13 = vcmp.gt.f32.partialorder %v353_v3, %v961_v51 }
 0x10c   : > { %782 = vmatmul.msk.f32.gmra.mxu1 %vm400_vm13, %v1129_v53 }
 0x110   : > { %v380_v4 = vpop.f32.mrf.mxu2 }
 0x111   : > { %vm409_vm14 = vcmp.gt.f32.partialorder %v380_v4, %v961_v51 }
 0x112   : > { %v356_v5 = vpop.f32.mrf.mxu0  ;;  %791 = vmatmul.msk.f32.gmra.mxu3 %vm409_vm14, %v1129_v53 }
 0x113   : > { %vm401_vm15 = vcmp.gt.f32.partialorder %v356_v5, %v961_v51 }
 0x114   : > { %783 = vmatmul.msk.f32.gmra.mxu1 %vm401_vm15, %v1129_v53 }
 0x118   : > { %v383_v6 = vpop.f32.mrf.mxu2 }
 0x119   : > { %vm410_vm0 = vcmp.gt.f32.partialorder %v383_v6, %v961_v51 }
 0x11a   : > { %792 = vmatmul.msk.f32.gmra.mxu3 %vm410_vm0, %v1129_v53 }
 0x11c   : > { %784 = vmatmul.msk.f32.gmra.mxu1 %vm402_vm1, %v1129_v53 }
 0x120   : > { %v386_v7 = vpop.f32.mrf.mxu2 }
 0x121   : > { %vm411_vm2 = vcmp.gt.f32.partialorder %v386_v7, %v961_v51 }
 0x122   : > { %793 = vmatmul.msk.f32.gmra.mxu3 %vm411_vm2, %v1129_v53 }
 0x151   : > { %v483_v8 = vpop.f32.mrf.mxu1 }
 0x152   : > { %vm544_vm3 = vcmp.gt.f32.partialorder %v483_v8, %v1307_v9 }
 0x153   : > { %v794_v11 = vsel %vm544_vm3, 1.0, %v1130_v10 }
 0x159   : > { %v486_v12 = vpop.f32.mrf.mxu1 }
 0x15a   : > { %vm545_vm4 = vcmp.gt.f32.partialorder %v486_v12, %v1307_v9 }
 0x15b   : > { %v795_v13 = vsel %vm545_vm4, 1.0, %v1130_v10 }
 0x15c   : > { %v819_v14 = vpack.c.bf16 %v795_v13, %v794_v11 }
 0x15e   : > { %820 = vst [vmem:[%s1314_s13] sm:$0xff] %v819_v14  }
 0x161   : > { %v489_v15 = vpop.f32.mrf.mxu1 }
 0x162   : > { %vm546_vm5 = vcmp.gt.f32.partialorder %v489_v15, %v1307_v9 }
 0x163   : > { %v796_v17 = vsel %vm546_vm5, 1.0, %v1130_v10 }
 0x165   : > { %v513_v16 = vpop.f32.mrf.mxu3 }
 0x166   : > { %vm554_vm7 = vcmp.gt.f32.partialorder %v513_v16, %v1307_v9 }
 0x167   : > { %v804_v22 = vsel %vm554_vm7, 1.0, %v1130_v10 }
 0x169   : > { %v492_v18 = vpop.f32.mrf.mxu1 }
 0x16a   : > { %vm547_vm6 = vcmp.gt.f32.partialorder %v492_v18, %v1307_v9 }
 0x16b   : > { %v797_v19 = vsel %vm547_vm6, 1.0, %v1130_v10 }
 0x16c   : > { %v822_v20 = vpack.c.bf16 %v797_v19, %v796_v17 }
 0x16d   : > { %v516_v21 = vpop.f32.mrf.mxu3 }
 0x16e   : > { %845 = vst [vmem:[%s1314_s13 + $0x8] sm:$0xff] %v822_v20   ;;  %vm555_vm8 = vcmp.gt.f32.partialorder %v516_v21, %v1307_v9 }
 0x16f   : > { %v805_v23 = vsel %vm555_vm8, 1.0, %v1130_v10 }
 0x170   : > { %v834_v24 = vpack.c.bf16 %v805_v23, %v804_v22 }
 0x171   : > { %v495_v25 = vpop.f32.mrf.mxu1 }
 0x172   : > { %849 = vst [vmem:[%s1314_s13 + $0x28] sm:$0xff] %v834_v24   ;;  %vm548_vm9 = vcmp.gt.f32.partialorder %v495_v25, %v1307_v9 }
 0x173   : > { %v798_v27 = vsel %vm548_vm9, 1.0, %v1130_v10 }
 0x175   : > { %v519_v26 = vpop.f32.mrf.mxu3 }
 0x176   : > { %vm556_vm11 = vcmp.gt.f32.partialorder %v519_v26, %v1307_v9 }
 0x177   : > { %v806_v32 = vsel %vm556_vm11, 1.0, %v1130_v10 }
 0x179   : > { %v498_v28 = vpop.f32.mrf.mxu1 }
 0x17a   : > { %vm549_vm10 = vcmp.gt.f32.partialorder %v498_v28, %v1307_v9 }
 0x17b   : > { %v799_v29 = vsel %vm549_vm10, 1.0, %v1130_v10 }
 0x17c   : > { %v825_v30 = vpack.c.bf16 %v799_v29, %v798_v27 }
 0x17d   : > { %v522_v31 = vpop.f32.mrf.mxu3 }
 0x17e   : > { %846 = vst [vmem:[%s1314_s13 + $0x10] sm:$0xff] %v825_v30   ;;  %vm557_vm12 = vcmp.gt.f32.partialorder %v522_v31, %v1307_v9 }
 0x17f   : > { %v807_v33 = vsel %vm557_vm12, 1.0, %v1130_v10 }
 0x180   : > { %v837_v34 = vpack.c.bf16 %v807_v33, %v806_v32 }
 0x181   : > { %v501_v35 = vpop.f32.mrf.mxu1 }
 0x182   : > { %850 = vst [vmem:[%s1314_s13 + $0x30] sm:$0xff] %v837_v34   ;;  %vm550_vm13 = vcmp.gt.f32.partialorder %v501_v35, %v1307_v9 }
 0x183   : > { %v800_v37 = vsel %vm550_vm13, 1.0, %v1130_v10 }
 0x185   : > { %v525_v36 = vpop.f32.mrf.mxu3 }
 0x186   : > { %vm558_vm15 = vcmp.gt.f32.partialorder %v525_v36, %v1307_v9 }
 0x187   : > { %v808_v42 = vsel %vm558_vm15, 1.0, %v1130_v10 }
 0x189   : > { %v504_v38 = vpop.f32.mrf.mxu1 }
 0x18a   : > { %vm551_vm14 = vcmp.gt.f32.partialorder %v504_v38, %v1307_v9 }
 0x18b   : > { %v801_v39 = vsel %vm551_vm14, 1.0, %v1130_v10 }
 0x18c   : > { %v828_v40 = vpack.c.bf16 %v801_v39, %v800_v37 }
 0x18d   : > { %v528_v41 = vpop.f32.mrf.mxu3 }
 0x18e   : > { %847 = vst [vmem:[%s1314_s13 + $0x18] sm:$0xff] %v828_v40   ;;  %vm559_vm0 = vcmp.gt.f32.partialorder %v528_v41, %v1307_v9 }
 0x18f   : > { %v809_v43 = vsel %vm559_vm0, 1.0, %v1130_v10 }
 0x190   : > { %v840_v44 = vpack.c.bf16 %v809_v43, %v808_v42 }
 0x191   : > { %v507_v45 = vpop.f32.mrf.mxu1 }
 0x192   : > { %851 = vst [vmem:[%s1314_s13 + $0x38] sm:$0xff] %v840_v44   ;;  %vm552_vm1 = vcmp.gt.f32.partialorder %v507_v45, %v1307_v9 }
 0x193   : > { %v802_v47 = vsel %vm552_vm1, 1.0, %v1130_v10 }
 0x195   : > { %v531_v46 = vpop.f32.mrf.mxu3 }
 0x196   : > { %vm560_vm3 = vcmp.gt.f32.partialorder %v531_v46, %v1307_v9 }
 0x197   : > { %v810_v52 = vsel %vm560_vm3, 1.0, %v1130_v10 }
 0x199   : > { %v510_v48 = vpop.f32.mrf.mxu1 }
 0x19a   : > { %vm553_vm2 = vcmp.gt.f32.partialorder %v510_v48, %v1307_v9 }
 0x19b   : > { %v803_v49 = vsel %vm553_vm2, 1.0, %v1130_v10 }
 0x19c   : > { %v831_v50 = vpack.c.bf16 %v803_v49, %v802_v47 }
 0x19d   : > { %v534_v51 = vpop.f32.mrf.mxu3 }
 0x19e   : > { %848 = vst [vmem:[%s1314_s13 + $0x20] sm:$0xff] %v831_v50   ;;  %vm561_vm4 = vcmp.gt.f32.partialorder %v534_v51, %v1307_v9 }
 0x19f   : > { %v811_v53 = vsel %vm561_vm4, 1.0, %v1130_v10 }
 0x1a0   : > { %v843_v54 = vpack.c.bf16 %v811_v53, %v810_v52 }
 0x1a2   : > { %852 = vst [vmem:[%s1314_s13 + $0x40] sm:$0xff] %v843_v54  }
 0x1a5   : > { %v537_v55 = vpop.f32.mrf.mxu3 }
 0x1a6   : > { %vm562_vm5 = vcmp.gt.f32.partialorder %v537_v55, %v1307_v9 }
 0x1a7   : > { %v812_v56 = vsel %vm562_vm5, 1.0, %v1130_v10 }
 0x1a8   : > { %v619_v57 = vpack.c.bf16 %v812_v56, %v812_v56 }
 0x1aa   : > { %638 = vst [vmem:[%s1314_s13 + $0x48] sm:$0xf] %v619_v57 }
 0x1ab   : > { %1080 = shalt.err (!%p1077_p10)
}
 0x1ac   : > { %s1131_s1 = smov 64   ;;  %s1132_s9 = smov 4  }
 0x1ad   : > { %898 = dma.vmem_to_hbm [thread:$0]  (%p1235_p3), %s653_s28, 1216, %s655_s26, %s640_s22, %s1131_s1, %s1131_s1, %s1132_s9  }
 0x1ae PF: > { %s669_s12 = sand.u32 1, %s1111_s18   ;;  %p1411_p12 = scmp.ge.s32.totalorder %s1123_s21, 2 }
 0x1af   : > { %s670_s13 = scalar_lea.sflag [#allocation4], %s669_s12 }
 0x1b0   : > { %p912_p13 = pnand %p1411_p12, %p1198_p6 }
 0x1b2   : > { %p913_p0 = pneg %p912_p13 }
 0x1b4   : > { %1106 = dma.done.wait (%p913_p0), %s670_s13, 1216  }
 0x1b5   : > { %1108 = vsyncadd (%p913_p0), %s670_s13, 4294966080  ;;  %p19_p5 = scmp.ge.s32.totalorder %s1225_s14, 4   ;;  %s1412_s18 = smov %s1115_s19 }
 0x1b6   : > { %s1413_s19 = smov %s1119_s20  ;;  %s1414_s20 = smov %s1241_s23 }
 0x1b7   : > { %s1415_s21 = smov %s1225_s14  ;;  %21 = sbr.rel (!%p19_p5) target bundleno = 8 (0x8), region = 93 }
 0x1bc   :  { %676 = vsyncpa [#allocation3], 1 }
 0x1bd   :  { %678 = vsyncpa [#allocation3 + $0x1], 1 }
 0x1be   :  { %679 = vsyncpa [#allocation6], 1 }
 0x1bf   :  { %680 = vsyncpa [#allocation4], 1 }
 0x1c0   :  { %682 = vsyncpa [#allocation4 + $0x1], 1 }

</bundles_post_ra>
